<compile_context>
chip_gen: v5e
topology: v5e:2x2
jax: 0.10.0
libtpu: 0.0.40
codegen_flags: <defaults>
</compile_context>

<pallas_src>
import functools

import jax
import jax.numpy as jnp
from jax.experimental import pallas as pl
from jax.experimental.pallas import tpu as pltpu


# ------------------------------- kernels -------------------------------------

def _linear_kernel(x_ref, w_ref, b_ref, o_ref, *, activation):
    # Single-K-block linear: y = act(x @ w + b).  No accumulator / revisit needed.
    y = jnp.dot(x_ref[...], w_ref[...], preferred_element_type=jnp.float32)
    y = y + b_ref[...].astype(jnp.float32)
    if activation == "tanh":
        y = jnp.tanh(y)
    o_ref[...] = y.astype(o_ref.dtype)


def _linear_acc_kernel(x_ref, w_ref, b_ref, o_ref, acc_ref, *, activation):
    # K-tiled linear: fp32 VMEM accumulator, bias+tanh fused into the epilogue.
    k = pl.program_id(2)

    @pl.when(k == 0)
    def _():
        acc_ref[...] = jnp.zeros_like(acc_ref)

    acc_ref[...] += jnp.dot(x_ref[...], w_ref[...],
                            preferred_element_type=jnp.float32)

    @pl.when(k == pl.num_programs(2) - 1)
    def _():
        y = acc_ref[...] + b_ref[...].astype(jnp.float32)
        if activation == "tanh":
            y = jnp.tanh(y)
        o_ref[...] = y.astype(o_ref.dtype)


def _gather_kernel(ids_ref, tbl_ref, o_ref, *, rows_per_step):
    # ids_ref: SMEM scalar-prefetch ids, tbl_ref: VMEM-resident full table (V, E),
    # o_ref: (rows_per_step, E) output block.  Small static unroll over the rows.
    base = pl.program_id(0) * rows_per_step
    for r in range(rows_per_step):
        idx = ids_ref[base + r]
        o_ref[pl.ds(r, 1), :] = tbl_ref[pl.ds(idx, 1), :]


# ------------------------------- wrappers ------------------------------------

def _pick_tile(dim, pref, align):
    """Largest align-multiple tile <= pref that evenly divides dim (else full dim)."""
    pref = max(int(pref), align)
    if dim <= pref:
        return dim
    t = (pref // align) * align
    while t >= align:
        if dim % t == 0:
            return t
        t -= align
    return dim


def _vmem_limit(nbytes_estimate):
    # Leave headroom; floor at the common 32 MiB scoped default, cap at v7x's
    # 64 MiB physical VMEM so one setting is safe across v5e / v6e / v7x.
    return int(min(max(2 * nbytes_estimate, 32 << 20), 64 << 20))


def linear_pallas(x, w, b, *, activation=None, tm=None, tn=None, tk=None):
    """y = act(x @ w + b).  x: [M, K], w: [K, N] (torch Linear weight transposed), b: [N]."""
    M, K = x.shape
    Kw, N = w.shape
    assert K == Kw, (K, Kw)

    tm = _pick_tile(M, tm if tm is not None else min(M, 1024), 8)
    tn = _pick_tile(N, tn if tn is not None else min(N, 512), 128)
    tk = _pick_tile(K, tk if tk is not None else min(K, 1024), 128)
    assert M % tm == 0 and N % tn == 0 and K % tk == 0
    nk = K // tk

    b2 = b.reshape(1, N)
    isz = lambda a: jnp.dtype(a.dtype).itemsize
    kx = tk if nk > 1 else K
    est = (2 * tm * kx * isz(x) + 2 * kx * tn * isz(w) + 2 * tm * tn * isz(x)
           + (tm * tn * 4 if nk > 1 else 0) + 2 * tn * isz(b))
    limit = _vmem_limit(est)

    if nk == 1:
        # x panel fits in one K block: drop the K grid axis entirely.
        return pl.pallas_call(
            functools.partial(_linear_kernel, activation=activation),
            out_shape=jax.ShapeDtypeStruct((M, N), x.dtype),
            grid_spec=pltpu.PrefetchScalarGridSpec(
                num_scalar_prefetch=0,
                grid=(M // tm, N // tn),
                in_specs=[pl.BlockSpec((tm, K), lambda i, j: (i, 0)),
                          pl.BlockSpec((K, tn), lambda i, j: (0, j)),
                          pl.BlockSpec((1, tn), lambda i, j: (0, j))],
                out_specs=pl.BlockSpec((tm, tn), lambda i, j: (i, j)),
            ),
            compiler_params=pltpu.CompilerParams(
                dimension_semantics=("parallel", "parallel"),
                vmem_limit_bytes=limit),
        )(x, w, b2)

    return pl.pallas_call(
        functools.partial(_linear_acc_kernel, activation=activation),
        out_shape=jax.ShapeDtypeStruct((M, N), x.dtype),
        grid_spec=pltpu.PrefetchScalarGridSpec(
            num_scalar_prefetch=0,
            grid=(M // tm, N // tn, nk),
            in_specs=[pl.BlockSpec((tm, tk), lambda i, j, k: (i, k)),
                      pl.BlockSpec((tk, tn), lambda i, j, k: (k, j)),
                      pl.BlockSpec((1, tn), lambda i, j, k: (0, j))],
            out_specs=pl.BlockSpec((tm, tn), lambda i, j, k: (i, j)),
            scratch_shapes=[pltpu.VMEM((tm, tn), jnp.float32)],
        ),
        compiler_params=pltpu.CompilerParams(
            dimension_semantics=("parallel", "parallel", "arbitrary"),
            vmem_limit_bytes=limit),
    )(x, w, b2)


def gather_rows_pallas(tbl, ids, *, rows_per_step=8):
    """out[i] = tbl[ids[i]].  tbl: [V, E] (VMEM-resident), ids: [n] int32."""
    V, E = tbl.shape
    n = int(ids.shape[0])
    G = int(rows_per_step)
    n_pad = pl.cdiv(n, G) * G
    ids = ids.astype(jnp.int32)
    if n_pad != n:
        ids = jnp.concatenate([ids, jnp.zeros((n_pad - n,), jnp.int32)])

    isz = jnp.dtype(tbl.dtype).itemsize
    limit = _vmem_limit((2 * V * E + 2 * G * E) * isz)

    out = pl.pallas_call(
        functools.partial(_gather_kernel, rows_per_step=G),
        out_shape=jax.ShapeDtypeStruct((n_pad, E), tbl.dtype),
        grid_spec=pltpu.PrefetchScalarGridSpec(
            num_scalar_prefetch=1,
            grid=(n_pad // G,),
            # Table block index never changes -> DMA'd once, stays in VMEM.
            in_specs=[pl.BlockSpec((V, E), lambda i, ids_ref: (0, 0))],
            out_specs=pl.BlockSpec((G, E), lambda i, ids_ref: (i, 0)),
        ),
        compiler_params=pltpu.CompilerParams(
            dimension_semantics=("parallel",),
            vmem_limit_bytes=limit),
    )(ids, tbl)
    return out[:n] if n_pad != n else out


# -------------------------------- forward ------------------------------------

def prefix_encoder_forward(prefix, params, cfg):
    """prefix: [B, P] int ids -> past_key_values [B, P, kv_size]."""
    B, P = prefix.shape
    emb = params["embedding"]                       # [pre_seq_len, kv_size]
    V, kv_size = emb.shape

    if cfg["prefix_projection"]:
        # Row-wise MLP commutes with the row gather: project the tiny table once,
        # then gather the projected rows (B*P/pre_seq_len fewer MXU ops & weight reads).
        h = linear_pallas(emb, params["w1"], params["b1"], activation="tanh",
                          tm=cfg.get("tm"), tn=cfg.get("tn"), tk=cfg.get("tk"))
        tbl = linear_pallas(h, params["w2"], params["b2"], activation=None,
                            tm=cfg.get("tm"), tn=cfg.get("tn"), tk=cfg.get("tk"))
    else:
        tbl = emb

    ids = jnp.clip(prefix.reshape(-1).astype(jnp.int32), 0, V - 1)  # guard OOB ids
    y = gather_rows_pallas(tbl, ids)                # [(B*P), kv_size]
    return y.reshape(B, P, kv_size)


# ------------------------------- reference -----------------------------------

def reference_forward(prefix, params, cfg):
    tokens = params["embedding"][prefix]            # [B, P, kv_size]
    if cfg["prefix_projection"]:
        h = jnp.tanh(tokens @ params["w1"] + params["b1"])
        return h @ params["w2"] + params["b2"]
    return tokens


# ---------------------------------- main --------------------------------------

if __name__ == "__main__":
    # Small config consistent with the module (lane-friendly dims).
    batch, prefix_len = 2, 8
    pre_seq_len = 16
    num_layers, kv_channels, mq_groups = 4, 16, 2
    hidden_size = 128
    kv_size = num_layers * kv_channels * mq_groups * 2            # 256

    key = jax.random.PRNGKey(0)
    k0, k1, k2, k3, k4, k5 = jax.random.split(key, 6)

    emb = 0.02 * jax.random.normal(k0, (pre_seq_len, kv_size), dtype=jnp.float32)
    # Weights stored [in, out] (torch Linear weight transposed) to feed the MXU directly.
    w1 = 0.02 * jax.random.normal(k1, (kv_size, hidden_size), dtype=jnp.float32)
    b1 = 0.02 * jax.random.normal(k2, (hidden_size,), dtype=jnp.float32)
    w2 = 0.02 * jax.random.normal(k3, (hidden_size, kv_size), dtype=jnp.float32)
    b2 = 0.02 * jax.random.normal(k4, (kv_size,), dtype=jnp.float32)
    prefix = jax.random.randint(k5, (batch, prefix_len), 0, pre_seq_len, dtype=jnp.int32)

    params = dict(embedding=emb, w1=w1, b1=b1, w2=w2, b2=b2)

    # tk=128 forces a 2-step K reduction on Linear1 (exercises the accumulator path);
    # Linear2 has K=128 so it takes the single-K-block fast path.  tn=128 gives a
    # 2-step parallel N grid on Linear2.
    cfg = dict(prefix_projection=True, tm=None, tn=128, tk=128)

    fwd = jax.jit(lambda p: prefix_encoder_forward(p, params, cfg))
    out = fwd(prefix)
    jax.block_until_ready(out)

    ref = reference_forward(prefix, params, cfg)
    assert out.shape == (batch, prefix_len, kv_size), out.shape
    err = jnp.max(jnp.abs(out - ref))
    assert jnp.allclose(out, ref, atol=2e-5, rtol=2e-5), f"max err {err}"

    # Also check the prefix_projection=False branch (pure embedding lookup).
    cfg_np = dict(prefix_projection=False)
    out_np = jax.jit(lambda p: prefix_encoder_forward(p, params, cfg_np))(prefix)
    jax.block_until_ready(out_np)
    ref_np = reference_forward(prefix, params, cfg_np)
    assert jnp.allclose(out_np, ref_np, atol=1e-6, rtol=1e-6)

    print("KERNEL_OK")
</pallas_src>

<mosaic_0001>
module attributes {stable_mosaic.version = 11 : i64} {
  func.func @_linear_acc_kernel(%arg0: i32, %arg1: i32, %arg2: i32, %arg3: memref<16x128xf32, #tpu.memory_space<vmem>>, %arg4: memref<128x128xf32, #tpu.memory_space<vmem>>, %arg5: memref<1x128xf32, #tpu.memory_space<vmem>>, %arg6: memref<16x128xf32, #tpu.memory_space<vmem>>, %arg7: memref<16x128xf32, #tpu.memory_space<vmem>>) attributes {dimension_semantics = [#tpu.dimension_semantics<parallel>, #tpu.dimension_semantics<parallel>, #tpu.dimension_semantics<arbitrary>], iteration_bounds = array<i64: 1, 1, 2>, scalar_prefetch = 0 : i64, scratch_operands = 1 : i64, tpu.core_type = #tpu.core_type<tc>, window_params = [{transform_indices = @transform_0, window_bounds = array<i64: 16, 128>}, {transform_indices = @transform_1, window_bounds = array<i64: 128, 128>}, {transform_indices = @transform_2, window_bounds = array<i64: 1, 128>}, {transform_indices = @transform_3, window_bounds = array<i64: 16, 128>}]} {
    %c0_i32 = arith.constant 0 : i32
    %0 = arith.cmpi eq, %arg2, %c0_i32 : i32
    %1 = arith.extui %0 : i1 to i32
    %c0_i32_0 = arith.constant 0 : i32
    %2 = arith.cmpi ne, %1, %c0_i32_0 : i32
    scf.if %2 {
      %cst_9 = arith.constant 0.000000e+00 : f32
      %12 = vector.broadcast %cst_9 : f32 to vector<16x128xf32>
      %c0_10 = arith.constant 0 : index
      %c0_11 = arith.constant 0 : index
      %13 = vector.load %arg7[%c0_10, %c0_11] : memref<16x128xf32, #tpu.memory_space<vmem>>, vector<16x128xf32>
      tpu.vector_store %arg7[%c0_10, %c0_11], %12 {strides = array<i32>} : memref<16x128xf32, #tpu.memory_space<vmem>>, vector<16x128xf32>,
    } else {
    }
    %c0 = arith.constant 0 : index
    %c0_1 = arith.constant 0 : index
    %3 = vector.load %arg7[%c0, %c0_1] : memref<16x128xf32, #tpu.memory_space<vmem>>, vector<16x128xf32>
    %c0_2 = arith.constant 0 : index
    %c0_3 = arith.constant 0 : index
    %4 = vector.load %arg3[%c0_2, %c0_3] : memref<16x128xf32, #tpu.memory_space<vmem>>, vector<16x128xf32>
    %c0_4 = arith.constant 0 : index
    %c0_5 = arith.constant 0 : index
    %5 = vector.load %arg4[%c0_4, %c0_5] : memref<128x128xf32, #tpu.memory_space<vmem>>, vector<128x128xf32>
    %cst = arith.constant dense<0.000000e+00> : vector<16x128xf32>
    %6 = tpu.matmul %4, %5, %cst {dimension_numbers = #tpu.dot_dimension_numbers<[1], [0], [0], [1], [0, 0, 1, 1], [], []>} : vector<16x128xf32>, vector<128x128xf32>, vector<16x128xf32> -> vector<16x128xf32>
    %7 = arith.addf %3, %6 : vector<16x128xf32>
    %c0_6 = arith.constant 0 : index
    %c0_7 = arith.constant 0 : index
    %8 = vector.load %arg7[%c0_6, %c0_7] : memref<16x128xf32, #tpu.memory_space<vmem>>, vector<16x128xf32>
    tpu.vector_store %arg7[%c0_6, %c0_7], %7 {strides = array<i32>} : memref<16x128xf32, #tpu.memory_space<vmem>>, vector<16x128xf32>,
    %c1_i32 = arith.constant 1 : i32
    %9 = arith.cmpi eq, %arg2, %c1_i32 : i32
    %10 = arith.extui %9 : i1 to i32
    %c0_i32_8 = arith.constant 0 : i32
    %11 = arith.cmpi ne, %10, %c0_i32_8 : i32
    scf.if %11 {
      %c0_9 = arith.constant 0 : index
      %c0_10 = arith.constant 0 : index
      %12 = vector.load %arg7[%c0_9, %c0_10] : memref<16x128xf32, #tpu.memory_space<vmem>>, vector<16x128xf32>
      %c0_11 = arith.constant 0 : index
      %c0_12 = arith.constant 0 : index
      %13 = vector.load %arg5[%c0_11, %c0_12] : memref<1x128xf32, #tpu.memory_space<vmem>>, vector<1x128xf32>
      %14 = vector.broadcast %13 : vector<1x128xf32> to vector<16x128xf32>
      %15 = arith.addf %12, %14 : vector<16x128xf32>
      %16 = math.tanh %15 : vector<16x128xf32>
      %c0_13 = arith.constant 0 : index
      %c0_14 = arith.constant 0 : index
      %17 = vector.load %arg6[%c0_13, %c0_14] : memref<16x128xf32, #tpu.memory_space<vmem>>, vector<16x128xf32>
      tpu.vector_store %arg6[%c0_13, %c0_14], %16 {strides = array<i32>} : memref<16x128xf32, #tpu.memory_space<vmem>>, vector<16x128xf32>,
    } else {
    }
    return
  }
  func.func @transform_0(%arg0: i32, %arg1: i32, %arg2: i32) -> (i32, i32) {
    %c0_i32 = arith.constant 0 : i32
    return %arg0, %arg2 : i32, i32
  }
  func.func @transform_1(%arg0: i32, %arg1: i32, %arg2: i32) -> (i32, i32) {
    %c0_i32 = arith.constant 0 : i32
    return %arg2, %arg1 : i32, i32
  }
  func.func @transform_2(%arg0: i32, %arg1: i32, %arg2: i32) -> (i32, i32) {
    %c0_i32 = arith.constant 0 : i32
    %c0_i32_0 = arith.constant 0 : i32
    return %c0_i32, %arg1 : i32, i32
  }
  func.func @transform_3(%arg0: i32, %arg1: i32, %arg2: i32) -> (i32, i32) {
    %c0_i32 = arith.constant 0 : i32
    return %arg0, %arg1 : i32, i32
  }
}

module attributes {stable_mosaic.version = 11 : i64} {
  func.func @_linear_kernel(%arg0: i32, %arg1: i32, %arg2: memref<16x128xf32, #tpu.memory_space<vmem>>, %arg3: memref<128x128xf32, #tpu.memory_space<vmem>>, %arg4: memref<1x128xf32, #tpu.memory_space<vmem>>, %arg5: memref<16x128xf32, #tpu.memory_space<vmem>>) attributes {dimension_semantics = [#tpu.dimension_semantics<parallel>, #tpu.dimension_semantics<parallel>], iteration_bounds = array<i64: 1, 2>, scalar_prefetch = 0 : i64, scratch_operands = 0 : i64, tpu.core_type = #tpu.core_type<tc>, window_params = [{transform_indices = @transform_0, window_bounds = array<i64: 16, 128>}, {transform_indices = @transform_1, window_bounds = array<i64: 128, 128>}, {transform_indices = @transform_2, window_bounds = array<i64: 1, 128>}, {transform_indices = @transform_3, window_bounds = array<i64: 16, 128>}]} {
    %c0 = arith.constant 0 : index
    %c0_0 = arith.constant 0 : index
    %0 = vector.load %arg2[%c0, %c0_0] : memref<16x128xf32, #tpu.memory_space<vmem>>, vector<16x128xf32>
    %c0_1 = arith.constant 0 : index
    %c0_2 = arith.constant 0 : index
    %1 = vector.load %arg3[%c0_1, %c0_2] : memref<128x128xf32, #tpu.memory_space<vmem>>, vector<128x128xf32>
    %cst = arith.constant dense<0.000000e+00> : vector<16x128xf32>
    %2 = tpu.matmul %0, %1, %cst {dimension_numbers = #tpu.dot_dimension_numbers<[1], [0], [0], [1], [0, 0, 1, 1], [], []>} : vector<16x128xf32>, vector<128x128xf32>, vector<16x128xf32> -> vector<16x128xf32>
    %c0_3 = arith.constant 0 : index
    %c0_4 = arith.constant 0 : index
    %3 = vector.load %arg4[%c0_3, %c0_4] : memref<1x128xf32, #tpu.memory_space<vmem>>, vector<1x128xf32>
    %4 = vector.broadcast %3 : vector<1x128xf32> to vector<16x128xf32>
    %5 = arith.addf %2, %4 : vector<16x128xf32>
    %c0_5 = arith.constant 0 : index
    %c0_6 = arith.constant 0 : index
    %6 = vector.load %arg5[%c0_5, %c0_6] : memref<16x128xf32, #tpu.memory_space<vmem>>, vector<16x128xf32>
    tpu.vector_store %arg5[%c0_5, %c0_6], %5 {strides = array<i32>} : memref<16x128xf32, #tpu.memory_space<vmem>>, vector<16x128xf32>,
    return
  }
  func.func @transform_0(%arg0: i32, %arg1: i32) -> (i32, i32) {
    %c0_i32 = arith.constant 0 : i32
    %c0_i32_0 = arith.constant 0 : i32
    return %arg0, %c0_i32 : i32, i32
  }
  func.func @transform_1(%arg0: i32, %arg1: i32) -> (i32, i32) {
    %c0_i32 = arith.constant 0 : i32
    %c0_i32_0 = arith.constant 0 : i32
    return %c0_i32, %arg1 : i32, i32
  }
  func.func @transform_2(%arg0: i32, %arg1: i32) -> (i32, i32) {
    %c0_i32 = arith.constant 0 : i32
    %c0_i32_0 = arith.constant 0 : i32
    return %c0_i32, %arg1 : i32, i32
  }
  func.func @transform_3(%arg0: i32, %arg1: i32) -> (i32, i32) {
    %c0_i32 = arith.constant 0 : i32
    return %arg0, %arg1 : i32, i32
  }
}

module attributes {stable_mosaic.version = 11 : i64} {
  func.func @_gather_kernel(%arg0: i32, %arg1: memref<16xi32, #tpu.memory_space<smem>>, %arg2: memref<16x256xf32, #tpu.memory_space<vmem>>, %arg3: memref<8x256xf32, #tpu.memory_space<vmem>>) attributes {dimension_semantics = [#tpu.dimension_semantics<parallel>], iteration_bounds = array<i64: 2>, scalar_prefetch = 1 : i64, scratch_operands = 0 : i64, tpu.core_type = #tpu.core_type<tc>, window_params = [{pipeline_mode = #tpu.pipeline_mode<synchronous>, transform_indices = @transform_0, window_bounds = array<i64: 16, 256>}, {transform_indices = @transform_1, window_bounds = array<i64: 8, 256>}]} {
    %c8_i32 = arith.constant 8 : i32
    %0 = arith.muli %arg0, %c8_i32 : i32
    %c0_i32 = arith.constant 0 : i32
    %1 = arith.addi %0, %c0_i32 : i32
    %2 = arith.index_cast %1 : i32 to index
    %3 = memref.load %arg1[%2] : memref<16xi32, #tpu.memory_space<smem>>
    %4 = arith.index_cast %3 : i32 to index
    %c0 = arith.constant 0 : index
    %5 = vector.load %arg2[%4, %c0] : memref<16x256xf32, #tpu.memory_space<vmem>>, vector<1x256xf32>
    %c0_0 = arith.constant 0 : index
    %c0_1 = arith.constant 0 : index
    %6 = vector.load %arg3[%c0_0, %c0_1] : memref<8x256xf32, #tpu.memory_space<vmem>>, vector<1x256xf32>
    tpu.vector_store %arg3[%c0_0, %c0_1], %5 {strides = array<i32>} : memref<8x256xf32, #tpu.memory_space<vmem>>, vector<1x256xf32>,
    %c1_i32 = arith.constant 1 : i32
    %7 = arith.addi %0, %c1_i32 : i32
    %8 = arith.index_cast %7 : i32 to index
    %9 = memref.load %arg1[%8] : memref<16xi32, #tpu.memory_space<smem>>
    %10 = arith.index_cast %9 : i32 to index
    %c0_2 = arith.constant 0 : index
    %11 = vector.load %arg2[%10, %c0_2] : memref<16x256xf32, #tpu.memory_space<vmem>>, vector<1x256xf32>
    %c1 = arith.constant 1 : index
    %c0_3 = arith.constant 0 : index
    %12 = vector.load %arg3[%c1, %c0_3] : memref<8x256xf32, #tpu.memory_space<vmem>>, vector<1x256xf32>
    tpu.vector_store %arg3[%c1, %c0_3], %11 {strides = array<i32>} : memref<8x256xf32, #tpu.memory_space<vmem>>, vector<1x256xf32>,
    %c2_i32 = arith.constant 2 : i32
    %13 = arith.addi %0, %c2_i32 : i32
    %14 = arith.index_cast %13 : i32 to index
    %15 = memref.load %arg1[%14] : memref<16xi32, #tpu.memory_space<smem>>
    %16 = arith.index_cast %15 : i32 to index
    %c0_4 = arith.constant 0 : index
    %17 = vector.load %arg2[%16, %c0_4] : memref<16x256xf32, #tpu.memory_space<vmem>>, vector<1x256xf32>
    %c2 = arith.constant 2 : index
    %c0_5 = arith.constant 0 : index
    %18 = vector.load %arg3[%c2, %c0_5] : memref<8x256xf32, #tpu.memory_space<vmem>>, vector<1x256xf32>
    tpu.vector_store %arg3[%c2, %c0_5], %17 {strides = array<i32>} : memref<8x256xf32, #tpu.memory_space<vmem>>, vector<1x256xf32>,
    %c3_i32 = arith.constant 3 : i32
    %19 = arith.addi %0, %c3_i32 : i32
    %20 = arith.index_cast %19 : i32 to index
    %21 = memref.load %arg1[%20] : memref<16xi32, #tpu.memory_space<smem>>
    %22 = arith.index_cast %21 : i32 to index
    %c0_6 = arith.constant 0 : index
    %23 = vector.load %arg2[%22, %c0_6] : memref<16x256xf32, #tpu.memory_space<vmem>>, vector<1x256xf32>
    %c3 = arith.constant 3 : index
    %c0_7 = arith.constant 0 : index
    %24 = vector.load %arg3[%c3, %c0_7] : memref<8x256xf32, #tpu.memory_space<vmem>>, vector<1x256xf32>
    tpu.vector_store %arg3[%c3, %c0_7], %23 {strides = array<i32>} : memref<8x256xf32, #tpu.memory_space<vmem>>, vector<1x256xf32>,
    %c4_i32 = arith.constant 4 : i32
    %25 = arith.addi %0, %c4_i32 : i32
    %26 = arith.index_cast %25 : i32 to index
    %27 = memref.load %arg1[%26] : memref<16xi32, #tpu.memory_space<smem>>
    %28 = arith.index_cast %27 : i32 to index
    %c0_8 = arith.constant 0 : index
    %29 = vector.load %arg2[%28, %c0_8] : memref<16x256xf32, #tpu.memory_space<vmem>>, vector<1x256xf32>
    %c4 = arith.constant 4 : index
    %c0_9 = arith.constant 0 : index
    %30 = vector.load %arg3[%c4, %c0_9] : memref<8x256xf32, #tpu.memory_space<vmem>>, vector<1x256xf32>
    tpu.vector_store %arg3[%c4, %c0_9], %29 {strides = array<i32>} : memref<8x256xf32, #tpu.memory_space<vmem>>, vector<1x256xf32>,
    %c5_i32 = arith.constant 5 : i32
    %31 = arith.addi %0, %c5_i32 : i32
    %32 = arith.index_cast %31 : i32 to index
    %33 = memref.load %arg1[%32] : memref<16xi32, #tpu.memory_space<smem>>
    %34 = arith.index_cast %33 : i32 to index
    %c0_10 = arith.constant 0 : index
    %35 = vector.load %arg2[%34, %c0_10] : memref<16x256xf32, #tpu.memory_space<vmem>>, vector<1x256xf32>
    %c5 = arith.constant 5 : index
    %c0_11 = arith.constant 0 : index
    %36 = vector.load %arg3[%c5, %c0_11] : memref<8x256xf32, #tpu.memory_space<vmem>>, vector<1x256xf32>
    tpu.vector_store %arg3[%c5, %c0_11], %35 {strides = array<i32>} : memref<8x256xf32, #tpu.memory_space<vmem>>, vector<1x256xf32>,
    %c6_i32 = arith.constant 6 : i32
    %37 = arith.addi %0, %c6_i32 : i32
    %38 = arith.index_cast %37 : i32 to index
    %39 = memref.load %arg1[%38] : memref<16xi32, #tpu.memory_space<smem>>
    %40 = arith.index_cast %39 : i32 to index
    %c0_12 = arith.constant 0 : index
    %41 = vector.load %arg2[%40, %c0_12] : memref<16x256xf32, #tpu.memory_space<vmem>>, vector<1x256xf32>
    %c6 = arith.constant 6 : index
    %c0_13 = arith.constant 0 : index
    %42 = vector.load %arg3[%c6, %c0_13] : memref<8x256xf32, #tpu.memory_space<vmem>>, vector<1x256xf32>
    tpu.vector_store %arg3[%c6, %c0_13], %41 {strides = array<i32>} : memref<8x256xf32, #tpu.memory_space<vmem>>, vector<1x256xf32>,
    %c7_i32 = arith.constant 7 : i32
    %43 = arith.addi %0, %c7_i32 : i32
    %44 = arith.index_cast %43 : i32 to index
    %45 = memref.load %arg1[%44] : memref<16xi32, #tpu.memory_space<smem>>
    %46 = arith.index_cast %45 : i32 to index
    %c0_14 = arith.constant 0 : index
    %47 = vector.load %arg2[%46, %c0_14] : memref<16x256xf32, #tpu.memory_space<vmem>>, vector<1x256xf32>
    %c7 = arith.constant 7 : index
    %c0_15 = arith.constant 0 : index
    %48 = vector.load %arg3[%c7, %c0_15] : memref<8x256xf32, #tpu.memory_space<vmem>>, vector<1x256xf32>
    tpu.vector_store %arg3[%c7, %c0_15], %47 {strides = array<i32>} : memref<8x256xf32, #tpu.memory_space<vmem>>, vector<1x256xf32>,
    return
  }
  func.func @transform_0(%arg0: i32, %arg1: memref<16xi32, #tpu.memory_space<smem>>) -> (i32, i32) {
    %c0_i32 = arith.constant 0 : i32
    %c0_i32_0 = arith.constant 0 : i32
    %c0_i32_1 = arith.constant 0 : i32
    return %c0_i32, %c0_i32_0 : i32, i32
  }
  func.func @transform_1(%arg0: i32, %arg1: memref<16xi32, #tpu.memory_space<smem>>) -> (i32, i32) {
    %c0_i32 = arith.constant 0 : i32
    %c0_i32_0 = arith.constant 0 : i32
    return %arg0, %c0_i32 : i32, i32
  }
}

</mosaic_0001>

<bundles_post_ra>
// kernel: _lambda_.4
= control target key start
LH: loop header
LB: loop body
LE: loop exit
PB: predicated region body
PF: predicated region fallthrough
CT: control target
= control target key end

     0   :  { %8 = vsyncpa [#allocation3], 0  ;;  %s758_s0 = inlined_call_operand.vmem [shape: f32[16,128], index: 0, kind: input, shape index: {}]   ;;  %s759_s1 = inlined_call_operand.hbm [shape: f32[128,256], index: 1, kind: input, shape index: {}]   ;;  %s760_s2 = inlined_call_operand.vmem [shape: f32[1,256], index: 2, kind: input, shape index: {}]   ;;  %s761_s3 = inlined_call_operand.vmem [shape: f32[16,256], index: 3, kind: output, shape index: {}]  }
   0x1   :  { %10 = vsyncpa [#allocation3 + $0x1], 0  ;;  %s623_s12 = smov 0   ;;  %s625_s13 = smov 0  }
   0x2   :  { %s627_s14 = smov 0   ;;  %s629_s15 = smov 0  }
   0x3   :  { %s631_s16 = smov 0   ;;  %s633_s17 = smov 0  }
   0x4 LB: > { %s429_s18 = sadd.s32 4294967295, %s598_s17   ;;  %s25_s19 = sadd.s32 1, %s594_s16  ;;  %s598_s17 = sphi %s633_s17, %s16_s17   ;;  %s594_s16 = sphi %s631_s16, %s769_s16   ;;  %s590_s15 = sphi %s629_s15, %s768_s15   ;;  %s586_s14 = sphi %s627_s14, %s767_s14   ;;  %s582_s13 = sphi %s625_s13, %s766_s13   ;;  %s578_s12 = sphi %s623_s12, %s765_s12  }
   0x5   : > { %p26_p0 = scmp.ge.s32.totalorder %s25_s19, 2  ;;  %s61_s20 = sadd.s32 1, %s586_s14 }
   0x6   : > { %p68_p1 = scmp.ne.s32.totalorder %s586_s14, %s582_s13  ;;  %p69_p2 = scmp.eq.s32.totalorder %s598_s17, 0 }
   0x7   : > { %s771_s19 = smov (%p26_p0, %s25_s19), 0  ;;  %p74_p4 = scmp.ne.s32.totalorder %s582_s13, %s578_s12 }
   0x8   : > { %p659_p3 = por %p69_p2, %p68_p1  ;;  %s58_s22 = ssub.s32 %s594_s16, %s771_s19 }
   0x9   : > { %p75_p5 = scmp.eq.s32.totalorder %s429_s18, 0  ;;  %p59_p6 = scmp.eq.s32.totalorder %s58_s22, 0 }
   0xa   : > { %p126_p7 = scmp.eq.s32.totalorder %s429_s18, 1  ;;  %p465_p10 = scmp.lt.s32.totalorder %s598_s17, 2 }
   0xb   : > { %p666_p8 = por %p75_p5, %p74_p4  ;;  %s161_s26 = sand.u32 1, %s586_s14  }
   0xc   : > { %s671_s24 = scalar_select %p59_p6, %s586_s14, %s61_s20  }
   0xd   : > { %p673_p9 = por %p126_p7, %p68_p1  ;;  %s435_s27 = sshll.u32 %s594_s16, 3 }
   0xe   : > { %s434_s28 = sshll.u32 %s161_s26, 7  ;;  %s169_s4 = scalar_lea.hbm %s759_s1, %s435_s27 }
   0xf   : > { %s170_s5 = sshll.u32 %s169_s4, 4  ;;  %s165_s6 = scalar_lea.vmem [#allocation2], %s434_s28  ;;  %s171_s5 = int_to_ptr.hbm [resolvable:$true] %s170_s5 }
  0x10   : > { %s172_s7 = sshll.u32 %s165_s6, 4  ;;  %p462_p11 = pnand %p465_p10, %p659_p3  ;;  %s173_s7 = int_to_ptr.vmem [resolvable:$true] %s172_s7 }
  0x11   : > { %p436_p12 = scmp.ge.s32.totalorder %s598_s17, 1  ;;  %s162_s8 = scalar_lea.sflag [#allocation3], %s161_s26 }
  0x12   : > { %s600_s9 = smov 256   ;;  %s601_s10 = smov 128  }
  0x13   : > { %s602_s11 = smov 8   ;;  %p186_p13 = scmp.lt.s32.totalorder %s598_s17, 3 }
  0x14   : > { %464 = dma.hbm_to_vmem [thread:$0]  (!%p462_p11), %s171_s5, 2048, %s173_s7, %s162_s8, %s600_s9, %s601_s10, %s602_s11  }
  0x15   : > { %p187_p0 = pnand %p436_p12, %p186_p13 }
  0x16   : > { %s688_s12 = sand.u32 (!%p187_p0), 1, %s582_s13  }
  0x17   : > { %190 = sbr.rel (%p187_p0) target bundleno = 199 (0xc7), region = 32  ;;  %s437_s18 = sshll.u32 (!%p187_p0), %s688_s12, 7 }
  0x18   : > { %s193_s20 = scalar_lea.sflag (!%p187_p0), [#allocation3], %s688_s12  ;;  %s692_s22 = scalar_lea.vmem (!%p187_p0), [#allocation2], %s437_s18 }
  0x1c   : > { %573 = dma.done.wait (%p666_p8), %s193_s20, 2048  }
  0x1d   : > { %575 = vsyncadd (%p666_p8), %s193_s20, 4294965248  ;;  %p233_p1 = scmp.lt.s32.totalorder %s590_s15, 1  ;;  %v254_v0 = vld [vmem:[%s692_s22 + $0x78] sm:$0xff]  ;;  %v253_v1 = vld [vmem:[%s692_s22 + $0x70] sm:$0xff]  ;;  %s438_s5 = sshll.u32 %s688_s12, 4 }
  0x1e   : > { %259 = vmatpush.msra.mxu0 %v254_v0  ;;  %443 = vmatpush.msra.mxu1 %v254_v0  ;;  %v252_v2 = vld [vmem:[%s692_s22 + $0x68] sm:$0xff]  ;;  %v251_v3 = vld [vmem:[%s692_s22 + $0x60] sm:$0xff]  ;;  %v250_v4 = vld [vmem:[%s692_s22 + $0x58] sm:$0xff]  ;;  %s226_s8 = scalar_lea.vmem [#allocation4], %s438_s5  ;;  %s440_s9 = sshll.u32 (%p673_p9), %s590_s15, 3 }
  0x1f   : > { %s702_s21 = scalar_select %p233_p1, %s590_s15, 1  ;;  %v249_v5 = vld [vmem:[%s692_s22 + $0x50] sm:$0xff]  ;;  %v248_v6 = vld [vmem:[%s692_s22 + $0x48] sm:$0xff]  ;;  %v247_v7 = vld [vmem:[%s692_s22 + $0x40] sm:$0xff] }
  0x20   : > { %260 = vmatpush.msra.mxu0 %v253_v1  ;;  %444 = vmatpush.msra.mxu1 %v253_v1  ;;  %v246_v8 = vld [vmem:[%s692_s22 + $0x38] sm:$0xff]  ;;  %v245_v9 = vld [vmem:[%s692_s22 + $0x30] sm:$0xff]  ;;  %v244_v10 = vld [vmem:[%s692_s22 + $0x28] sm:$0xff]  ;;  %s295_s12 = scalar_lea.vmem (%p673_p9), %s761_s3, %s440_s9 }
  0x21   : > { %s235_s27 = scalar_lea.vmem %s760_s2, %s702_s21  ;;  %v243_v11 = vld [vmem:[%s692_s22 + $0x20] sm:$0xff]  ;;  %v242_v12 = vld [vmem:[%s692_s22 + $0x18] sm:$0xff]  ;;  %v241_v13 = vld [vmem:[%s692_s22 + $0x10] sm:$0xff] }
  0x22   : > { %261 = vmatpush.msra.mxu0 %v252_v2  ;;  %445 = vmatpush.msra.mxu1 %v252_v2  ;;  %v240_v14 = vld [vmem:[%s692_s22 + $0x8] sm:$0xff]  ;;  %v239_v15 = vld [vmem:[%s692_s22] sm:$0xff] }
  0x23   : > { %v237_v16 = vld [vmem:[%s758_s0] sm:$0xff]  ;;  %v238_v17 = vld [vmem:[%s758_s0 + $0x8] sm:$0xff] }
  0x24   : > { %262 = vmatpush.msra.mxu0 %v251_v3  ;;  %446 = vmatpush.msra.mxu1 %v251_v3  ;;  %v517_v18 = vld [vmem:[%s235_s27] ss:$0 sm:$0xff] }
  0x26   : > { %263 = vmatpush.msra.mxu0 %v250_v4  ;;  %447 = vmatpush.msra.mxu1 %v250_v4 }
  0x28   : > { %264 = vmatpush.msra.mxu0 %v249_v5  ;;  %448 = vmatpush.msra.mxu1 %v249_v5 }
  0x2a   : > { %265 = vmatpush.msra.mxu0 %v248_v6  ;;  %449 = vmatpush.msra.mxu1 %v248_v6 }
  0x2c   : > { %266 = vmatpush.msra.mxu0 %v247_v7  ;;  %450 = vmatpush.msra.mxu1 %v247_v7 }
  0x2e   : > { %267 = vmatpush.msra.mxu0 %v246_v8  ;;  %451 = vmatpush.msra.mxu1 %v246_v8 }
  0x30   : > { %268 = vmatpush.msra.mxu0 %v245_v9  ;;  %452 = vmatpush.msra.mxu1 %v245_v9 }
  0x32   : > { %269 = vmatpush.msra.mxu0 %v244_v10  ;;  %453 = vmatpush.msra.mxu1 %v244_v10 }
  0x34   : > { %270 = vmatpush.msra.mxu0 %v243_v11  ;;  %454 = vmatpush.msra.mxu1 %v243_v11 }
  0x36   : > { %271 = vmatpush.msra.mxu0 %v242_v12  ;;  %455 = vmatpush.msra.mxu1 %v242_v12 }
  0x38   : > { %272 = vmatpush.msra.mxu0 %v241_v13  ;;  %456 = vmatpush.msra.mxu1 %v241_v13 }
  0x3a   : > { %273 = vmatpush.msra.mxu0 %v240_v14  ;;  %457 = vmatpush.msra.mxu1 %v240_v14 }
  0x3c   : > { %274 = vmatpush.msra.mxu0 %v239_v15  ;;  %458 = vmatpush.msra.mxu1 %v239_v15 }
  0x3d   : > { %275 = vmatmul.f32.vlgmr.msra.gmra.mxu0 %v237_v16  ;;  %278 = vmatmul.f32.vlgmr.msra.gmra.mxu1 %v238_v17 }
  0xba   : > { %v276_v19 = vpop.f32.mrf.mxu0  ;;  %v279_v20 = vpop.f32.mrf.mxu1  ;;  %290 = sbr.rel (!%p673_p9) target bundleno = 199 (0xc7), region = 40 }
  0xbb   : > { %v277_v21 = vadd.f32 %v517_v18, %v276_v19  ;;  %v280_v22 = vadd.f32 %v517_v18, %v279_v20 }
  0xbd   : > { %282 = vst [vmem:[%s226_s8] sm:$0xff] %v277_v21 }
  0xbe   : > { %283 = vst [vmem:[%s226_s8 + $0x8] sm:$0xff] %v280_v22 }
  0xc4   : > { %v326_v23 = vld [vmem:[%s226_s8] sm:$0xff] }
  0xc5   : > { %v328_v24 = vld [vmem:[%s226_s8 + $0x8] sm:$0xff]  ;;  %327 = vst [vmem:[%s295_s12] sm:$0xff] %v326_v23 }
  0xc6   : > { %329 = vst [vmem:[%s295_s12 + $0x10] sm:$0xff] %v328_v24 }
  0xc7 PF: > { %s16_s17 = sadd.s32 1, %s598_s17   ;;  %s765_s12 = smov %s582_s13 }
  0xc8   : > { %p13_p2 = scmp.ge.s32.totalorder %s16_s17, 4   ;;  %s766_s13 = smov %s586_s14 }
  0xc9   : > { %s767_s14 = smov %s671_s24  ;;  %s768_s15 = smov %s594_s16 }
  0xca   : > { %s769_s16 = smov %s771_s19  ;;  %15 = sbr.rel (!%p13_p2) target bundleno = 4 (0x4), region = 116 }
  0xcf   :  { %345 = vsyncpa [#allocation3], 1 }
  0xd0   :  { %347 = vsyncpa [#allocation3 + $0x1], 1 }

// kernel: _lambda_.3
= control target key start
LH: loop header
LB: loop body
LE: loop exit
PB: predicated region body
PF: predicated region fallthrough
CT: control target
= control target key end

     0   :  { %8 = vsyncpa [#allocation4], 0  ;;  %s862_s0 = inlined_call_operand.hbm [shape: f32[16,256], index: 0, kind: input, shape index: {}]   ;;  %s863_s1 = inlined_call_operand.hbm [shape: f32[256,128], index: 1, kind: input, shape index: {}]   ;;  %s864_s2 = inlined_call_operand.vmem [shape: f32[1,128], index: 2, kind: input, shape index: {}]   ;;  %s865_s3 = inlined_call_operand.vmem [shape: f32[16,128], index: 3, kind: output, shape index: {}]  }
   0x1   :  { %10 = vsyncpa [#allocation4 + $0x1], 0 }
   0x2   :  { %11 = vsyncpa [#allocation6], 0 }
   0x3   :  { %13 = vsyncpa [#allocation6 + $0x1], 0  ;;  %s724_s12 = smov 0   ;;  %s726_s13 = smov 0  }
   0x4   :  { %s728_s14 = smov 0   ;;  %s730_s15 = smov 0  }
   0x5   :  { %s732_s16 = smov 0   ;;  %s734_s17 = smov 0  }
   0x6 LB: > { %s480_s18 = sadd.s32 4294967295, %s698_s17   ;;  %s31_s19 = sadd.s32 1, %s694_s16  ;;  %s698_s17 = sphi %s734_s17, %s19_s17   ;;  %s694_s16 = sphi %s732_s16, %s873_s16   ;;  %s690_s15 = sphi %s730_s15, %s872_s15   ;;  %s686_s14 = sphi %s728_s14, %s871_s14   ;;  %s682_s13 = sphi %s726_s13, %s870_s13   ;;  %s678_s12 = sphi %s724_s12, %s869_s12  }
   0x7   : > { %p32_p0 = scmp.ge.s32.totalorder %s31_s19, 2  ;;  %s47_s20 = sadd.s32 1, %s686_s14 }
   0x8   : > { %p54_p1 = scmp.ne.s32.totalorder %s686_s14, %s682_s13  ;;  %p55_p2 = scmp.eq.s32.totalorder %s698_s17, 0 }
   0x9   : > { %s875_s19 = smov (%p32_p0, %s31_s19), 0  ;;  %p60_p4 = scmp.ne.s32.totalorder %s682_s13, %s678_s12 }
   0xa   : > { %p760_p3 = por %p55_p2, %p54_p1  ;;  %s43_s22 = ssub.s32 %s694_s16, %s875_s19 }
   0xb   : > { %p61_p5 = scmp.eq.s32.totalorder %s480_s18, 0  ;;  %p45_p6 = scmp.eq.s32.totalorder %s43_s22, 0 }
   0xc   : > { %p526_p8 = scmp.lt.s32.totalorder %s698_s17, 2  ;;  %s776_s25 = sand.u32 1, %s686_s14  }
   0xd   : > { %p767_p7 = por %p61_p5, %p60_p4  ;;  %s485_s26 = sshll.u32 %s694_s16, 3 }
   0xe   : > { %s773_s24 = scalar_select %p45_p6, %s686_s14, %s47_s20  }
   0xf   : > { %s484_s27 = sshll.u32 %s776_s25, 4  ;;  %s183_s30 = scalar_lea.hbm %s862_s0, %s485_s26 }
  0x10   : > { %s184_s4 = sshll.u32 %s183_s30, 4  ;;  %s176_s5 = scalar_lea.vmem [#allocation3], %s484_s27  ;;  %s185_s4 = int_to_ptr.hbm [resolvable:$true] %s184_s4 }
  0x11   : > { %s186_s6 = sshll.u32 %s176_s5, 4  ;;  %p785_p9 = pnand %p526_p8, %p760_p3  ;;  %s187_s6 = int_to_ptr.vmem [resolvable:$true] %s186_s6 }
  0x12   : > { %p489_p10 = scmp.ge.s32.totalorder %s698_s17, 1  ;;  %s173_s8 = scalar_lea.sflag [#allocation4], %s776_s25 }
  0x13   : > { %s700_s9 = smov 256   ;;  %s701_s10 = smov 128  }
  0x14   : > { %s702_s11 = smov 8   ;;  %p217_p11 = scmp.lt.s32.totalorder %s698_s17, 3 }
  0x15   : > { %522 = dma.hbm_to_vmem [thread:$0]  (!%p785_p9), %s185_s4, 256, %s187_s6, %s173_s8, %s700_s9, %s701_s10, %s702_s11  }
  0x16   : > { %s486_s12 = sshll.u32 %s776_s25, 7  ;;  %s498_s18 = sshll.u32 %s694_s16, 7 }
  0x17   : > { %p218_p12 = pnand %p489_p10, %p217_p11  ;;  %s206_s22 = scalar_lea.hbm %s863_s1, %s498_s18 }
  0x18   : > { %s200_s26 = scalar_lea.vmem [#allocation5], %s486_s12  ;;  %s207_s28 = sshll.u32 %s206_s22, 4  ;;  %s208_s28 = int_to_ptr.hbm [resolvable:$true] %s207_s28 }
  0x19   : > { %s209_s27 = sshll.u32 %s200_s26, 4  ;;  %s197_s29 = scalar_lea.sflag [#allocation6], %s776_s25  ;;  %s210_s27 = int_to_ptr.vmem [resolvable:$true] %s209_s27 }
  0x1a   : > { %525 = dma.hbm_to_vmem [thread:$0]  (!%p785_p9), %s208_s28, 2048, %s210_s27, %s197_s29, %s701_s10, %s701_s10, %s702_s11  }
  0x1b   : > { %221 = sbr.rel (%p218_p12) target bundleno = 225 (0xe1), region = 32  ;;  %s223_s30 = sand.u32 (!%p218_p12), 1, %s682_s13  }
  0x1c   : > { %s490_s4 = sshll.u32 (!%p218_p12), %s223_s30, 4  ;;  %s224_s5 = scalar_lea.sflag (!%p218_p12), [#allocation4], %s223_s30 }
  0x1d   : > { %s803_s6 = scalar_lea.vmem (!%p218_p12), [#allocation3], %s490_s4 }
  0x20   : > { %669 = dma.done.wait (%p767_p7), %s224_s5, 256  }
  0x21   : > { %671 = vsyncadd (%p767_p7), %s224_s5, 4294967040  ;;  %s491_s8 = sshll.u32 %s223_s30, 7  ;;  %s234_s9 = scalar_lea.sflag [#allocation6], %s223_s30 }
  0x22   : > { %s809_s12 = scalar_lea.vmem [#allocation5], %s491_s8 }
  0x23   : > { %673 = dma.done.wait (%p767_p7), %s234_s9, 2048  }
  0x24   : > { %675 = vsyncadd (%p767_p7), %s234_s9, 4294965248  ;;  %p492_p13 = scmp.ne.s32.totalorder %s690_s15, 0 }
  0x26   : > { %289 = sbr.rel (%p492_p13) target bundleno = 46 (0x2e), region = 44 }
  0x2b   : > { %v703_v0 = vmov 0.0  }
  0x2c   : > { %290 = vst [vmem:[#allocation2] sm:$0xff] %v703_v0 }
  0x2d   : > { %291 = vst [vmem:[#allocation2 + $0x8] sm:$0xff] %v703_v0 }
  0x2e PF: > { %v311_v1 = vld [vmem:[%s809_s12 + $0x78] sm:$0xff]  ;;  %v310_v2 = vld [vmem:[%s809_s12 + $0x70] sm:$0xff]  ;;  %v309_v3 = vld [vmem:[%s809_s12 + $0x68] sm:$0xff]  ;;  %p493_p0 = scmp.ne.s32.totalorder %s690_s15, 1 }
  0x2f   : > { %312 = vmatpush.msra.mxu0 %v311_v1  ;;  %499 = vmatpush.msra.mxu1 %v311_v1  ;;  %v308_v4 = vld [vmem:[%s809_s12 + $0x60] sm:$0xff]  ;;  %v307_v5 = vld [vmem:[%s809_s12 + $0x58] sm:$0xff]  ;;  %v306_v6 = vld [vmem:[%s809_s12 + $0x50] sm:$0xff] }
  0x30   : > { %v305_v7 = vld [vmem:[%s809_s12 + $0x48] sm:$0xff]  ;;  %v304_v8 = vld [vmem:[%s809_s12 + $0x40] sm:$0xff]  ;;  %v303_v9 = vld [vmem:[%s809_s12 + $0x38] sm:$0xff] }
  0x31   : > { %313 = vmatpush.msra.mxu0 %v310_v2  ;;  %500 = vmatpush.msra.mxu1 %v310_v2  ;;  %v302_v10 = vld [vmem:[%s809_s12 + $0x30] sm:$0xff]  ;;  %v301_v11 = vld [vmem:[%s809_s12 + $0x28] sm:$0xff]  ;;  %v300_v12 = vld [vmem:[%s809_s12 + $0x20] sm:$0xff] }
  0x32   : > { %v299_v13 = vld [vmem:[%s809_s12 + $0x18] sm:$0xff]  ;;  %v298_v14 = vld [vmem:[%s809_s12 + $0x10] sm:$0xff]  ;;  %v297_v15 = vld [vmem:[%s809_s12 + $0x8] sm:$0xff] }
  0x33   : > { %314 = vmatpush.msra.mxu0 %v309_v3  ;;  %501 = vmatpush.msra.mxu1 %v309_v3  ;;  %v296_v16 = vld [vmem:[%s809_s12] sm:$0xff]  ;;  %v295_v18 = vld [vmem:[%s803_s6 + $0x8] sm:$0xff]  ;;  %v292_v19 = vld [vmem:[#allocation2] sm:$0xff] }
  0x34   : > { %v294_v17 = vld [vmem:[%s803_s6] sm:$0xff]  ;;  %v293_v20 = vld [vmem:[#allocation2 + $0x8] sm:$0xff] }
  0x35   : > { %315 = vmatpush.msra.mxu0 %v308_v4  ;;  %502 = vmatpush.msra.mxu1 %v308_v4 }
  0x37   : > { %316 = vmatpush.msra.mxu0 %v307_v5  ;;  %503 = vmatpush.msra.mxu1 %v307_v5 }
  0x39   : > { %317 = vmatpush.msra.mxu0 %v306_v6  ;;  %504 = vmatpush.msra.mxu1 %v306_v6 }
  0x3b   : > { %318 = vmatpush.msra.mxu0 %v305_v7  ;;  %505 = vmatpush.msra.mxu1 %v305_v7 }
  0x3d   : > { %319 = vmatpush.msra.mxu0 %v304_v8  ;;  %506 = vmatpush.msra.mxu1 %v304_v8 }
  0x3f   : > { %320 = vmatpush.msra.mxu0 %v303_v9  ;;  %507 = vmatpush.msra.mxu1 %v303_v9 }
  0x41   : > { %321 = vmatpush.msra.mxu0 %v302_v10  ;;  %508 = vmatpush.msra.mxu1 %v302_v10 }
  0x43   : > { %322 = vmatpush.msra.mxu0 %v301_v11  ;;  %509 = vmatpush.msra.mxu1 %v301_v11 }
  0x45   : > { %323 = vmatpush.msra.mxu0 %v300_v12  ;;  %510 = vmatpush.msra.mxu1 %v300_v12 }
  0x47   : > { %324 = vmatpush.msra.mxu0 %v299_v13  ;;  %511 = vmatpush.msra.mxu1 %v299_v13 }
  0x49   : > { %325 = vmatpush.msra.mxu0 %v298_v14  ;;  %512 = vmatpush.msra.mxu1 %v298_v14 }
  0x4b   : > { %326 = vmatpush.msra.mxu0 %v297_v15  ;;  %513 = vmatpush.msra.mxu1 %v297_v15 }
  0x4d   : > { %327 = vmatpush.msra.mxu0 %v296_v16  ;;  %514 = vmatpush.msra.mxu1 %v296_v16 }
  0x4e   : > { %328 = vmatmul.f32.vlgmr.msra.gmra.mxu0 %v294_v17  ;;  %331 = vmatmul.f32.vlgmr.msra.gmra.mxu1 %v295_v18 }
  0xcb   : > { %v329_v21 = vpop.f32.mrf.mxu0  ;;  %v332_v22 = vpop.f32.mrf.mxu1  ;;  %342 = sbr.rel (%p493_p0) target bundleno = 225 (0xe1), region = 48 }
  0xcc   : > { %v335_v23 = vadd.f32 %v329_v21, %v292_v19  ;;  %v336_v24 = vadd.f32 %v332_v22, %v293_v20 }
  0xce   : > { %337 = vst [vmem:[#allocation2] sm:$0xff] %v335_v23 }
  0xcf   : > { %338 = vst [vmem:[#allocation2 + $0x8] sm:$0xff] %v336_v24 }
  0xd0   : > { %v579_v26 = vld [vmem:[%s864_s2] ss:$0 sm:$0xff] }
  0xd5   : > { %v343_v25 = vld [vmem:[#allocation2] sm:$0xff] }
  0xd6   : > { %v344_v27 = vld [vmem:[#allocation2 + $0x8] sm:$0xff]  ;;  %v349_v28 = vadd.f32 %v579_v26, %v343_v25 }
  0xd7   : > { %v350_v29 = vadd.f32 %v579_v26, %v344_v27 }
  0xd8   : > { %580 = vtanh.f32 %v349_v28 }
  0xd9   : > { %582 = vtanh.f32 %v350_v29 }
  0xde   : > { %v581_v30 = vpop.eup %580 }
  0xdf   : > { %v583_v31 = vpop.eup %582  ;;  %353 = vst [vmem:[%s865_s3] sm:$0xff] %v581_v30 }
  0xe0   : > { %354 = vst [vmem:[%s865_s3 + $0x8] sm:$0xff] %v583_v31 }
  0xe1 PF: > { %s19_s17 = sadd.s32 1, %s698_s17   ;;  %s869_s12 = smov %s682_s13 }
  0xe2   : > { %p16_p1 = scmp.ge.s32.totalorder %s19_s17, 4   ;;  %s870_s13 = smov %s686_s14 }
  0xe3   : > { %s871_s14 = smov %s773_s24  ;;  %s872_s15 = smov %s694_s16 }
  0xe4   : > { %s873_s16 = smov %s875_s19  ;;  %18 = sbr.rel (!%p16_p1) target bundleno = 6 (0x6), region = 96 }
  0xe9   :  { %383 = vsyncpa [#allocation4], 1 }
  0xea   :  { %385 = vsyncpa [#allocation4 + $0x1], 1 }
  0xeb   :  { %386 = vsyncpa [#allocation6], 1 }
  0xec   :  { %388 = vsyncpa [#allocation6 + $0x1], 1 }

// kernel: _lambda_.5
= control target key start
LH: loop header
LB: loop body
LE: loop exit
PB: predicated region body
PF: predicated region fallthrough
CT: control target
= control target key end

     0   :  { %s467_s12 = smov [#allocation3]   ;;  %s648_s0 = inlined_call_operand.vmem [shape: s32[16], index: 0, kind: input, shape index: {}]   ;;  %s649_s1 = inlined_call_operand.vmem [shape: f32[16,256], index: 1, kind: input, shape index: {}]   ;;  %s650_s2 = inlined_call_operand.hbm [shape: f32[16,256], index: 2, kind: output, shape index: {}]  }
   0x1   :  { %s8_s11 = sshll.u32 %s648_s0, 4  ;;  %s9_s11 = int_to_ptr.vmem [resolvable:$true] %s8_s11 }
   0x2   :  { %11 = dma.vmem_to_smem %s9_s11, 16, %s467_s12, [#allocation2] }
   0x3   :  { %445 = dma.done.wait [#allocation2], 16 }
   0x4   :  { %446 = vsyncadd [#allocation2], 4294967280 }
   0x5   :  { %14 = sfence }
   0x6   :  { %15 = vsyncpa [#allocation5], 0 }
   0x7   :  { %17 = vsyncpa [#allocation5 + $0x1], 0  ;;  %s486_s13 = smov 0   ;;  %s488_s14 = smov 0  }
   0x8   :  { %s490_s15 = smov 0   ;;  %s492_s16 = smov 0  }
   0x9 LB: > { %s507_s0 = sadd.s32 4294967295, %s465_s16   ;;  %s307_s17 = sadd.s32 4294967294, %s465_s16   ;;  %s465_s16 = sphi %s492_s16, %s660_s16   ;;  %s461_s15 = sphi %s490_s15, %s659_s15   ;;  %s457_s14 = sphi %s488_s14, %s658_s14   ;;  %s453_s13 = sphi %s486_s13, %s657_s13  }
   0xa   : > { %s511_s18 = sadd.s32 1, %s465_s16   ;;  %s51_s19 = sadd.s32 1, %s461_s15 }
   0xb   : > { %s48_s20 = ssub.s32 %s465_s16, %s511_s18  ;;  %p61_p0 = scmp.ne.s32.totalorder %s461_s15, %s457_s14 }
   0xc   : > { %p49_p1 = scmp.eq.s32.totalorder %s48_s20, 0  ;;  %p62_p2 = scmp.eq.s32.totalorder %s507_s0, 1 }
   0xd   : > { %p67_p3 = scmp.ne.s32.totalorder %s457_s14, %s453_s13  ;;  %p68_p4 = scmp.eq.s32.totalorder %s307_s17, 1 }
   0xe   : > { %s522_s21 = scalar_select %p49_p1, %s461_s15, %s51_s19  }
   0xf   : > { %p524_p5 = por %p62_p2, %p61_p0  ;;  %p528_p6 = por %p68_p4, %p67_p3 }
  0x10   : > { %p309_p7 = scmp.ge.s32.totalorder %s465_s16, 1  ;;  %p89_p8 = scmp.lt.s32.totalorder %s465_s16, 3 }
  0x12   : > { %p90_p9 = pnand %p309_p7, %p89_p8 }
  0x13   : > { %s651_s24 = sand.u32 (!%p90_p9), 1, %s457_s14   ;;  %s536_s25 = sshll.u32 (!%p90_p9), %s507_s0, 3 }
  0x14   : > { %93 = sbr.rel (%p90_p9) target bundleno = 63 (0x3f), region = 24  ;;  %s310_s26 = sshll.u32 (!%p90_p9), %s651_s24, 4 }
  0x15   : > { %s105_s27 = sld [smem:[#allocation3 + %s536_s25]] (!%p90_p9)  ;;  %s121_s28 = sadd.s32 (!%p90_p9), 1, %s536_s25 }
  0x16   : > { %s135_s29 = sadd.s32 (!%p90_p9), 2, %s536_s25  ;;  %s122_s30 = sld [smem:[#allocation3 + %s121_s28]] (!%p90_p9) }
  0x17   : > { %s149_s3 = sadd.s32 (!%p90_p9), 3, %s536_s25  ;;  %s136_s4 = sld [smem:[#allocation3 + %s135_s29]] (!%p90_p9) }
  0x18   : > { %s163_s5 = sadd.s32 (!%p90_p9), 4, %s536_s25  ;;  %s545_s6 = sld [smem:[#allocation3 + %s149_s3]] (!%p90_p9) }
  0x19   : > { %v115_v0 = vlaneseq  ;;  %s177_s7 = sadd.s32 5, %s536_s25  ;;  %s548_s11 = sld [smem:[#allocation3 + %s163_s5]] }
  0x1a   : > { %s554_s17 = sld [smem:[#allocation3 + %s177_s7]] }
  0x1b   : > { %s106_s8 = sshra.s32 %s105_s27, 3  ;;  %s109_s9 = sand.u32 7, %s105_s27  ;;  %vm550_vm0 = vcmp.lt.s32.totalorder %v115_v0, 256 }
  0x1c   : > { %s340_s10 = sshll.u32 %s106_s8, 4  ;;  %s123_s29 = sshra.s32 %s122_s30, 3 }
  0x1d   : > { %s112_s12 = sadd.s32 %s340_s10, %s109_s9  ;;  %s126_s3 = sand.u32 7, %s122_s30 }
  0x1e   : > { %s113_s28 = scalar_lea.vmem %s649_s1, %s112_s12  ;;  %s341_s27 = sshll.u32 %s123_s29, 4 }
  0x1f   : > { %v114_v2 = vld [vmem:[%s113_s28] ss:$8 sm:$0x3]  ;;  %s559_s8 = scalar_lea.vmem [#allocation4], %s310_s26  ;;  %s129_s5 = sadd.s32 %s341_s27, %s126_s3 }
  0x20   : > { %119 = vst.msk [vmem:[%s559_s8] ss:$8 sm:$0x3] %vm550_vm0, %v114_v2  ;;  %s137_s7 = sshra.s32 %s136_s4, 3  ;;  %s130_s12 = scalar_lea.vmem %s649_s1, %s129_s5 }
  0x21   : > { %s140_s19 = sand.u32 7, %s136_s4  ;;  %v131_v3 = vld [vmem:[%s130_s12] ss:$8 sm:$0x3]  ;;  %s342_s30 = sshll.u32 %s137_s7, 4 }
  0x22   : > { %s151_s26 = sshra.s32 %s545_s6, 3  ;;  %316 = vst.msk [vmem:[%s559_s8 + $0x1] ss:$8 sm:$0x3] %vm550_vm0, %v131_v3  ;;  %s143_s20 = sadd.s32 %s342_s30, %s140_s19 }
  0x23   : > { %s154_s28 = sand.u32 7, %s545_s6  ;;  %s144_s27 = scalar_lea.vmem %s649_s1, %s143_s20 }
  0x24   : > { %s343_s24 = sshll.u32 %s151_s26, 4  ;;  %v145_v4 = vld [vmem:[%s144_s27] ss:$8 sm:$0x3]  ;;  %s165_s4 = sshra.s32 %s548_s11, 3 }
  0x25   : > { %s157_s5 = sadd.s32 %s343_s24, %s154_s28  ;;  %319 = vst.msk [vmem:[%s559_s8 + $0x2] ss:$8 sm:$0x3] %vm550_vm0, %v145_v4  ;;  %s168_s12 = sand.u32 7, %s548_s11 }
  0x26   : > { %s158_s10 = scalar_lea.vmem %s649_s1, %s157_s5  ;;  %s344_s6 = sshll.u32 %s165_s4, 4 }
  0x27   : > { %v159_v5 = vld [vmem:[%s158_s10] ss:$8 sm:$0x3]  ;;  %s179_s19 = sshra.s32 %s554_s17, 3  ;;  %s171_s24 = sadd.s32 %s344_s6, %s168_s12 }
  0x28   : > { %322 = vst.msk [vmem:[%s559_s8 + $0x3] ss:$8 sm:$0x3] %vm550_vm0, %v159_v5  ;;  %s182_s30 = sand.u32 7, %s554_s17  ;;  %s172_s28 = scalar_lea.vmem %s649_s1, %s171_s24 }
  0x29   : > { %s345_s29 = sshll.u32 %s179_s19, 4  ;;  %v173_v6 = vld [vmem:[%s172_s28] ss:$8 sm:$0x3]  ;;  %s191_s11 = sadd.s32 6, %s536_s25 }
  0x2a   : > { %s185_s3 = sadd.s32 %s345_s29, %s182_s30  ;;  %325 = vst.msk [vmem:[%s559_s8 + $0x4] ss:$8 sm:$0x3] %vm550_vm0, %v173_v6  ;;  %s192_s7 = sld [smem:[#allocation3 + %s191_s11]] }
  0x2b   : > { %s186_s4 = scalar_lea.vmem %s649_s1, %s185_s3  ;;  %s205_s9 = sadd.s32 7, %s536_s25 }
  0x2c   : > { %v187_v7 = vld [vmem:[%s186_s4] ss:$8 sm:$0x3]  ;;  %s348_s17 = sshll.u32 %s507_s0, 4  ;;  %s206_s10 = sld [smem:[#allocation3 + %s205_s9]] }
  0x2d   : > { %328 = vst.msk [vmem:[%s559_s8 + $0x5] ss:$8 sm:$0x3] %vm550_vm0, %v187_v7  ;;  %s231_s19 = scalar_lea.hbm %s650_s2, %s348_s17  ;;  %s233_s24 = sshll.u32 %s559_s8, 4  ;;  %s234_s24 = int_to_ptr.vmem [resolvable:$true] %s233_s24 }
  0x2e   : > { %s235_s28 = sshll.u32 %s231_s19, 4  ;;  %s656_s12 = sand.u32 1, %s457_s14   ;;  %s236_s28 = int_to_ptr.hbm [resolvable:$true] %s235_s28 }
  0x2f   : > { %s220_s6 = scalar_lea.sflag [#allocation5], %s656_s12  ;;  %s415_s19 = sshra.s32 %s236_s28, 4  ;;  %s416_s19 = int_to_ptr.hbm [resolvable:$true] %s415_s19 }
  0x30   : > { %s193_s30 = sshra.s32 %s192_s7, 3  ;;  %s196_s26 = sand.u32 7, %s192_s7 }
  0x31   : > { %s346_s20 = sshll.u32 %s193_s30, 4  ;;  %p422_p13 = scmp.lt.s32.totalorder %s416_s19, %s650_s2 }
  0x32   : > { %s199_s29 = sadd.s32 %s346_s20, %s196_s26  ;;  %s207_s3 = sshra.s32 %s206_s10, 3 }
  0x33   : > { %s200_s0 = scalar_lea.vmem %s649_s1, %s199_s29  ;;  %s210_s27 = sand.u32 7, %s206_s10 }
  0x34   : > { %v201_v8 = vld [vmem:[%s200_s0] ss:$8 sm:$0x3]  ;;  %s347_s5 = sshll.u32 %s207_s3, 4  ;;  %s417_s10 = scalar_lea.hbm %s416_s19, 16 }
  0x35   : > { %331 = vst.msk [vmem:[%s559_s8 + $0x6] ss:$8 sm:$0x3] %vm550_vm0, %v201_v8  ;;  %s213_s4 = sadd.s32 %s347_s5, %s210_s27  ;;  %p418_p10 = scmp.ne.s32.totalorder %s416_s19, %s417_s10 }
  0x36   : > { %s214_s17 = scalar_lea.vmem %s649_s1, %s213_s4  ;;  %s421_s20 = scalar_lea.hbm %s650_s2, 32 }
  0x37   : > { %v215_v9 = vld [vmem:[%s214_s17] ss:$8 sm:$0x3]  ;;  %p419_p11 = pnand %p418_p10, %p524_p5  ;;  %p423_p0 = scmp.lt.s32.totalorder %s421_s20, %s417_s10 }
  0x38   : > { %334 = vst.msk [vmem:[%s559_s8 + $0x7] ss:$8 sm:$0x3] %vm550_vm0, %v215_v9 }
  0x39   : > { %p420_p12 = pneg %p419_p11  ;;  %p424_p1 = por %p423_p0, %p422_p13 }
  0x3b   : > { %p425_p2 = pnand %p424_p1, %p420_p12 }
  0x3d   : > { %428 = shalt.err (!%p425_p2)
}
  0x3e   : > { %349 = dma.vmem_to_hbm [thread:$0]  (%p524_p5), %s234_s24, 256, %s236_s28, %s220_s6  }
  0x3f PF: > { %p355_p3 = scmp.ge.s32.totalorder %s465_s16, 2  ;;  %s247_s8 = sand.u32 1, %s453_s13  }
  0x40   : > { %s248_s25 = scalar_lea.sflag [#allocation5], %s247_s8 }
  0x41   : > { %p352_p4 = pnand %p355_p3, %p528_p6 }
  0x43   : > { %p353_p7 = pneg %p352_p4 }
  0x45   : > { %448 = dma.done.wait (%p353_p7), %s248_s25, 256  }
  0x46   : > { %450 = vsyncadd (%p353_p7), %s248_s25, 4294967040  ;;  %p20_p8 = scmp.ge.s32.totalorder %s511_s18, 4   ;;  %s657_s13 = smov %s457_s14 }
  0x47   : > { %s658_s14 = smov %s461_s15  ;;  %s659_s15 = smov %s522_s21 }
  0x48   : > { %s660_s16 = smov %s511_s18  ;;  %22 = sbr.rel (!%p20_p8) target bundleno = 9 (0x9), region = 71 }
  0x4d   :  { %254 = vsyncpa [#allocation5], 1 }
  0x4e   :  { %256 = vsyncpa [#allocation5 + $0x1], 1 }

</bundles_post_ra>
